<compile_context>
chip_gen: v7x
topology: tpu7x:2x2x1
jax: 0.10.0
libtpu: 0.0.40
codegen_flags: <defaults>
</compile_context>

<pallas_src>
import functools

import jax
import jax.numpy as jnp
from jax.experimental import pallas as pl
from jax.experimental.pallas import tpu as pltpu


# ------------------------------ Pallas kernel -------------------------------

def _double_conv_kernel(x_ref, w1_ref, b1_ref, w2_ref, b2_ref,
                        o_ref, xp1_ref, xp2_ref, *, W, cin, cmid):
    # x_ref : (H, W*cin)              f32, one image, lane-packed (w, c)
    # w1_ref: (3, (W+2)*cin,  W*cmid) bf16, banded conv1 weights (BN scale folded)
    # b1_ref: (1, W*cmid)             f32, folded BN shift (+ conv bias), tiled over w
    # w2_ref: (3, (W+2)*cmid, W*cout) bf16, banded conv2 weights
    # b2_ref: (1, W*cout)             f32
    # o_ref : (H, W*cout)             f32, lane-dense output slab
    # xp1/xp2: bf16 VMEM scratch, zero-padded activations, lane-packed 2-D
    H = x_ref.shape[0]

    # Zero only the halo (top/bottom rows + left/right C-wide bands); the
    # interior is overwritten below, so it is never written twice.  Done every
    # grid step so the kernel is self-contained per image (safe under
    # "parallel" megacore sharding where each core has its own scratch).
    for xp, c in ((xp1_ref, cin), (xp2_ref, cmid)):
        wc = (W + 2) * c
        xp[0:1, :] = jnp.zeros((1, wc), jnp.bfloat16)
        xp[H + 1:H + 2, :] = jnp.zeros((1, wc), jnp.bfloat16)
        xp[1:H + 1, 0:c] = jnp.zeros((H, c), jnp.bfloat16)
        xp[1:H + 1, (W + 1) * c:(W + 2) * c] = jnp.zeros((H, c), jnp.bfloat16)

    # Single f32 -> bf16 cast at the interior store.
    xp1_ref[1:H + 1, cin:(W + 1) * cin] = x_ref[...].astype(jnp.bfloat16)

    def conv_bn_relu(xp_ref, w_ref, b_ref):
        # One MXU matmul per kernel row kh; the kw taps are pre-folded into the
        # banded weight matrix, so the LHS is a direct row-window slice of the
        # lane-packed padded scratch (no im2col relayout at all).
        acc = jnp.dot(xp_ref[0:H, :], w_ref[0],
                      preferred_element_type=jnp.float32)
        for kh in (1, 2):
            acc = acc + jnp.dot(xp_ref[kh:kh + H, :], w_ref[kh],
                                preferred_element_type=jnp.float32)
        # BN scale already folded into the weights -> just shift + ReLU.
        return jnp.maximum(acc + b_ref[...], 0.0)          # (H, W*cout) f32

    # conv1 -> intermediate stays on-chip in the padded bf16 scratch.
    y1 = conv_bn_relu(xp1_ref, w1_ref, b1_ref)             # (H, W*cmid)
    xp2_ref[1:H + 1, cmid:(W + 1) * cmid] = y1.astype(jnp.bfloat16)

    # conv2 -> lane-dense final output.
    o_ref[...] = conv_bn_relu(xp2_ref, w2_ref, b2_ref)


# --------------------------------- wrapper -----------------------------------

def _banded_weights(w, scale, W):
    # w: (3, 3, cin, cout) f32.  Fold the BatchNorm scale into the f32 weights,
    # then expand the kw taps into a banded ((W+2)*cin, W*cout) matrix per kh:
    #   banded[kh, wp*cin+ci, w*cout+co] = w[kh, wp-w, ci, co]  if 0 <= wp-w <= 2
    # so that in the kernel every kw shift is already baked into the matmul.
    _, _, cin, cout = w.shape
    w = w * scale                                           # fold BN scale (f32)
    wp = jnp.arange(W + 2)[:, None]
    wo = jnp.arange(W)[None, :]
    sel = jnp.stack([(wp == wo + k) for k in range(3)]).astype(w.dtype)  # (3,W+2,W)
    banded = jnp.einsum('kpw,hkio->hpiwo', sel, w)          # (3, W+2, cin, W, cout)
    return banded.reshape(3, (W + 2) * cin, W * cout).astype(jnp.bfloat16)


@jax.jit
def double_convolver(x, p):
    # x: NHWC f32
    N, H, W, Cin = x.shape
    Cmid = p["w1"].shape[-1]
    Cout = p["w2"].shape[-1]

    w1 = _banded_weights(p["w1"], p["scale1"], W)           # (3, (W+2)*Cin,  W*Cmid)
    w2 = _banded_weights(p["w2"], p["scale2"], W)           # (3, (W+2)*Cmid, W*Cout)
    b1 = jnp.tile(p["shift1"], W).reshape(1, W * Cmid)      # shift tiled over w
    b2 = jnp.tile(p["shift2"], W).reshape(1, W * Cout)
    x2 = x.reshape(N, H, W * Cin)                           # lane-packed (free)

    kernel = functools.partial(_double_conv_kernel, W=W, cin=Cin, cmid=Cmid)

    out = pl.pallas_call(
        kernel,
        out_shape=jax.ShapeDtypeStruct((N, H, W * Cout), jnp.float32),
        grid=(N,),                                          # one image per step
        in_specs=[
            pl.BlockSpec((None, H, W * Cin), lambda n: (n, 0, 0)),
            pl.BlockSpec((3, (W + 2) * Cin, W * Cmid), lambda n: (0, 0, 0)),
            pl.BlockSpec((1, W * Cmid), lambda n: (0, 0)),
            pl.BlockSpec((3, (W + 2) * Cmid, W * Cout), lambda n: (0, 0, 0)),
            pl.BlockSpec((1, W * Cout), lambda n: (0, 0)),
        ],
        out_specs=pl.BlockSpec((None, H, W * Cout), lambda n: (n, 0, 0)),
        scratch_shapes=[
            pltpu.VMEM((H + 2, (W + 2) * Cin), jnp.bfloat16),   # padded input
            pltpu.VMEM((H + 2, (W + 2) * Cmid), jnp.bfloat16),  # padded conv1 out
        ],
        compiler_params=pltpu.CompilerParams(
            dimension_semantics=("parallel",)),             # megacore over batch
    )(x2, w1, b1, w2, b2)

    return out.reshape(N, H, W, Cout)                       # free, contiguous


# ---------------------------- parameter creation -----------------------------

def _folded_bn(key, cout, conv_bias, eps=1e-5):
    # TODO(synk): BatchNorm is folded in eval mode (running statistics);
    # PyTorch's default train-mode batch statistics are not replicated.
    k1, k2, k3, k4 = jax.random.split(key, 4)
    gamma = 1.0 + 0.1 * jax.random.normal(k1, (cout,), jnp.float32)
    beta = 0.1 * jax.random.normal(k2, (cout,), jnp.float32)
    mean = 0.1 * jax.random.normal(k3, (cout,), jnp.float32)
    var = 1.0 + 0.1 * jax.random.uniform(k4, (cout,), jnp.float32)
    scale = gamma / jnp.sqrt(var + eps)
    shift = scale * (conv_bias - mean) + beta
    return scale, shift


def make_double_conv_params(key, cin, cout):
    ks = jax.random.split(key, 6)
    w1 = 0.1 * jax.random.normal(ks[0], (3, 3, cin, cout), jnp.float32)
    b1 = 0.1 * jax.random.normal(ks[1], (cout,), jnp.float32)
    s1, sh1 = _folded_bn(ks[2], cout, b1)
    w2 = 0.1 * jax.random.normal(ks[3], (3, 3, cout, cout), jnp.float32)
    b2 = 0.1 * jax.random.normal(ks[4], (cout,), jnp.float32)
    s2, sh2 = _folded_bn(ks[5], cout, b2)
    return dict(w1=w1, scale1=s1, shift1=sh1, w2=w2, scale2=s2, shift2=sh2)


# ------------------------------ pure-JAX reference ---------------------------

@jax.jit
def double_convolver_ref(x, p):
    def block(x, w, scale, shift):
        y = jax.lax.conv_general_dilated(
            x, w, window_strides=(1, 1), padding=((1, 1), (1, 1)),
            dimension_numbers=("NHWC", "HWIO", "NHWC"),
            precision=jax.lax.Precision.HIGHEST)
        return jnp.maximum(y * scale + shift, 0.0)

    x = block(x, p["w1"], p["scale1"], p["shift1"])
    return block(x, p["w2"], p["scale2"], p["shift2"])


# ----------------------------------- main -------------------------------------

if __name__ == "__main__":
    N, H, W = 2, 16, 16
    CIN, COUT = 4, 8           # DoubleConvolver(in_channels=4, out_channels=8)

    key = jax.random.PRNGKey(0)
    kx, kp = jax.random.split(key)
    x = jax.random.normal(kx, (N, H, W, CIN), jnp.float32)   # NHWC
    params = make_double_conv_params(kp, CIN, COUT)

    out = jax.block_until_ready(double_convolver(x, params))
    assert out.shape == (N, H, W, COUT), out.shape

    ref = jax.block_until_ready(double_convolver_ref(x, params))
    max_err = float(jnp.max(jnp.abs(out - ref)))
    # bf16 MXU operands with f32 accumulation vs f32 HIGHEST reference.
    assert max_err < 5e-2, f"max abs error {max_err}"

    print("KERNEL_OK")
</pallas_src>

<mosaic_0001>
module attributes {stable_mosaic.version = 11 : i64} {
  func.func @_double_conv_kernel(%arg0: i32, %arg1: memref<1x16x64xf32, #tpu.memory_space<vmem>>, %arg2: memref<3x72x128xbf16, #tpu.memory_space<vmem>>, %arg3: memref<1x128xf32, #tpu.memory_space<vmem>>, %arg4: memref<3x144x128xbf16, #tpu.memory_space<vmem>>, %arg5: memref<1x128xf32, #tpu.memory_space<vmem>>, %arg6: memref<1x16x128xf32, #tpu.memory_space<vmem>>, %arg7: memref<18x72xbf16, #tpu.memory_space<vmem>>, %arg8: memref<18x144xbf16, #tpu.memory_space<vmem>>) attributes {dimension_semantics = [#tpu.dimension_semantics<parallel>], iteration_bounds = array<i64: 2>, scalar_prefetch = 0 : i64, scratch_operands = 2 : i64, tpu.core_type = #tpu.core_type<tc>, window_params = [{transform_indices = @transform_0, window_bounds = array<i64: 1, 16, 64>}, {pipeline_mode = #tpu.pipeline_mode<synchronous>, transform_indices = @transform_1, window_bounds = array<i64: 3, 72, 128>}, {pipeline_mode = #tpu.pipeline_mode<synchronous>, transform_indices = @transform_2, window_bounds = array<i64: 1, 128>}, {pipeline_mode = #tpu.pipeline_mode<synchronous>, transform_indices = @transform_3, window_bounds = array<i64: 3, 144, 128>}, {pipeline_mode = #tpu.pipeline_mode<synchronous>, transform_indices = @transform_4, window_bounds = array<i64: 1, 128>}, {transform_indices = @transform_5, window_bounds = array<i64: 1, 16, 128>}]} {
    %cst = arith.constant 0.000000e+00 : bf16
    %0 = vector.broadcast %cst : bf16 to vector<1x72xbf16>
    %c0 = arith.constant 0 : index
    %c0_0 = arith.constant 0 : index
    %1 = vector.load %arg7[%c0, %c0_0] : memref<18x72xbf16, #tpu.memory_space<vmem>>, vector<1x72xbf16>
    tpu.vector_store %arg7[%c0, %c0_0], %0 {strides = array<i32>} : memref<18x72xbf16, #tpu.memory_space<vmem>>, vector<1x72xbf16>,
    %cst_1 = arith.constant 0.000000e+00 : bf16
    %2 = vector.broadcast %cst_1 : bf16 to vector<1x72xbf16>
    %c17 = arith.constant 17 : index
    %c0_2 = arith.constant 0 : index
    %3 = vector.load %arg7[%c17, %c0_2] : memref<18x72xbf16, #tpu.memory_space<vmem>>, vector<1x72xbf16>
    tpu.vector_store %arg7[%c17, %c0_2], %2 {strides = array<i32>} : memref<18x72xbf16, #tpu.memory_space<vmem>>, vector<1x72xbf16>,
    %cst_3 = arith.constant 0.000000e+00 : bf16
    %4 = vector.broadcast %cst_3 : bf16 to vector<16x4xbf16>
    %c1 = arith.constant 1 : index
    %c0_4 = arith.constant 0 : index
    %5 = vector.load %arg7[%c1, %c0_4] : memref<18x72xbf16, #tpu.memory_space<vmem>>, vector<16x4xbf16>
    tpu.vector_store %arg7[%c1, %c0_4], %4 {strides = array<i32>} : memref<18x72xbf16, #tpu.memory_space<vmem>>, vector<16x4xbf16>,
    %cst_5 = arith.constant 0.000000e+00 : bf16
    %6 = vector.broadcast %cst_5 : bf16 to vector<16x4xbf16>
    %c1_6 = arith.constant 1 : index
    %c68 = arith.constant 68 : index
    %7 = vector.load %arg7[%c1_6, %c68] : memref<18x72xbf16, #tpu.memory_space<vmem>>, vector<16x4xbf16>
    tpu.vector_store %arg7[%c1_6, %c68], %6 {strides = array<i32>} : memref<18x72xbf16, #tpu.memory_space<vmem>>, vector<16x4xbf16>,
    %cst_7 = arith.constant 0.000000e+00 : bf16
    %8 = vector.broadcast %cst_7 : bf16 to vector<1x144xbf16>
    %c0_8 = arith.constant 0 : index
    %c0_9 = arith.constant 0 : index
    %9 = vector.load %arg8[%c0_8, %c0_9] : memref<18x144xbf16, #tpu.memory_space<vmem>>, vector<1x144xbf16>
    tpu.vector_store %arg8[%c0_8, %c0_9], %8 {strides = array<i32>} : memref<18x144xbf16, #tpu.memory_space<vmem>>, vector<1x144xbf16>,
    %cst_10 = arith.constant 0.000000e+00 : bf16
    %10 = vector.broadcast %cst_10 : bf16 to vector<1x144xbf16>
    %c17_11 = arith.constant 17 : index
    %c0_12 = arith.constant 0 : index
    %11 = vector.load %arg8[%c17_11, %c0_12] : memref<18x144xbf16, #tpu.memory_space<vmem>>, vector<1x144xbf16>
    tpu.vector_store %arg8[%c17_11, %c0_12], %10 {strides = array<i32>} : memref<18x144xbf16, #tpu.memory_space<vmem>>, vector<1x144xbf16>,
    %cst_13 = arith.constant 0.000000e+00 : bf16
    %12 = vector.broadcast %cst_13 : bf16 to vector<16x8xbf16>
    %c1_14 = arith.constant 1 : index
    %c0_15 = arith.constant 0 : index
    %13 = vector.load %arg8[%c1_14, %c0_15] : memref<18x144xbf16, #tpu.memory_space<vmem>>, vector<16x8xbf16>
    tpu.vector_store %arg8[%c1_14, %c0_15], %12 {strides = array<i32>} : memref<18x144xbf16, #tpu.memory_space<vmem>>, vector<16x8xbf16>,
    %cst_16 = arith.constant 0.000000e+00 : bf16
    %14 = vector.broadcast %cst_16 : bf16 to vector<16x8xbf16>
    %c1_17 = arith.constant 1 : index
    %c136 = arith.constant 136 : index
    %15 = vector.load %arg8[%c1_17, %c136] : memref<18x144xbf16, #tpu.memory_space<vmem>>, vector<16x8xbf16>
    tpu.vector_store %arg8[%c1_17, %c136], %14 {strides = array<i32>} : memref<18x144xbf16, #tpu.memory_space<vmem>>, vector<16x8xbf16>,
    %c0_18 = arith.constant 0 : index
    %c0_19 = arith.constant 0 : index
    %c0_20 = arith.constant 0 : index
    %16 = vector.load %arg1[%c0_18, %c0_19, %c0_20] : memref<1x16x64xf32, #tpu.memory_space<vmem>>, vector<1x16x64xf32>
    %17 = vector.shape_cast %16 : vector<1x16x64xf32> to vector<16x64xf32>
    %18 = arith.truncf %17 : vector<16x64xf32> to vector<16x64xbf16>
    %c1_21 = arith.constant 1 : index
    %c4 = arith.constant 4 : index
    %19 = vector.load %arg7[%c1_21, %c4] : memref<18x72xbf16, #tpu.memory_space<vmem>>, vector<16x64xbf16>
    tpu.vector_store %arg7[%c1_21, %c4], %18 {strides = array<i32>} : memref<18x72xbf16, #tpu.memory_space<vmem>>, vector<16x64xbf16>,
    %c0_22 = arith.constant 0 : index
    %c0_23 = arith.constant 0 : index
    %20 = vector.load %arg7[%c0_22, %c0_23] : memref<18x72xbf16, #tpu.memory_space<vmem>>, vector<16x72xbf16>
    %c0_24 = arith.constant 0 : index
    %c0_25 = arith.constant 0 : index
    %c0_26 = arith.constant 0 : index
    %21 = vector.load %arg2[%c0_24, %c0_25, %c0_26] : memref<3x72x128xbf16, #tpu.memory_space<vmem>>, vector<1x72x128xbf16>
    %22 = vector.shape_cast %21 : vector<1x72x128xbf16> to vector<72x128xbf16>
    %cst_27 = arith.constant dense<0.000000e+00> : vector<16x128xf32>
    %23 = tpu.matmul %20, %22, %cst_27 {dimension_numbers = #tpu.dot_dimension_numbers<[1], [0], [0], [1], [0, 0, 1, 1], [], []>} : vector<16x72xbf16>, vector<72x128xbf16>, vector<16x128xf32> -> vector<16x128xf32>
    %c1_28 = arith.constant 1 : index
    %c0_29 = arith.constant 0 : index
    %24 = vector.load %arg7[%c1_28, %c0_29] : memref<18x72xbf16, #tpu.memory_space<vmem>>, vector<16x72xbf16>
    %c1_30 = arith.constant 1 : index
    %c0_31 = arith.constant 0 : index
    %c0_32 = arith.constant 0 : index
    %25 = vector.load %arg2[%c1_30, %c0_31, %c0_32] : memref<3x72x128xbf16, #tpu.memory_space<vmem>>, vector<1x72x128xbf16>
    %26 = vector.shape_cast %25 : vector<1x72x128xbf16> to vector<72x128xbf16>
    %cst_33 = arith.constant dense<0.000000e+00> : vector<16x128xf32>
    %27 = tpu.matmul %24, %26, %cst_33 {dimension_numbers = #tpu.dot_dimension_numbers<[1], [0], [0], [1], [0, 0, 1, 1], [], []>} : vector<16x72xbf16>, vector<72x128xbf16>, vector<16x128xf32> -> vector<16x128xf32>
    %28 = arith.addf %23, %27 : vector<16x128xf32>
    %c2 = arith.constant 2 : index
    %c0_34 = arith.constant 0 : index
    %29 = vector.load %arg7[%c2, %c0_34] : memref<18x72xbf16, #tpu.memory_space<vmem>>, vector<16x72xbf16>
    %c2_35 = arith.constant 2 : index
    %c0_36 = arith.constant 0 : index
    %c0_37 = arith.constant 0 : index
    %30 = vector.load %arg2[%c2_35, %c0_36, %c0_37] : memref<3x72x128xbf16, #tpu.memory_space<vmem>>, vector<1x72x128xbf16>
    %31 = vector.shape_cast %30 : vector<1x72x128xbf16> to vector<72x128xbf16>
    %cst_38 = arith.constant dense<0.000000e+00> : vector<16x128xf32>
    %32 = tpu.matmul %29, %31, %cst_38 {dimension_numbers = #tpu.dot_dimension_numbers<[1], [0], [0], [1], [0, 0, 1, 1], [], []>} : vector<16x72xbf16>, vector<72x128xbf16>, vector<16x128xf32> -> vector<16x128xf32>
    %33 = arith.addf %28, %32 : vector<16x128xf32>
    %c0_39 = arith.constant 0 : index
    %c0_40 = arith.constant 0 : index
    %34 = vector.load %arg3[%c0_39, %c0_40] : memref<1x128xf32, #tpu.memory_space<vmem>>, vector<1x128xf32>
    %35 = vector.broadcast %34 : vector<1x128xf32> to vector<16x128xf32>
    %36 = arith.addf %33, %35 : vector<16x128xf32>
    %cst_41 = arith.constant 0.000000e+00 : f32
    %37 = vector.broadcast %cst_41 : f32 to vector<16x128xf32>
    %38 = arith.maximumf %36, %37 : vector<16x128xf32>
    %39 = arith.truncf %38 : vector<16x128xf32> to vector<16x128xbf16>
    %c1_42 = arith.constant 1 : index
    %c8 = arith.constant 8 : index
    %40 = vector.load %arg8[%c1_42, %c8] : memref<18x144xbf16, #tpu.memory_space<vmem>>, vector<16x128xbf16>
    tpu.vector_store %arg8[%c1_42, %c8], %39 {strides = array<i32>} : memref<18x144xbf16, #tpu.memory_space<vmem>>, vector<16x128xbf16>,
    %c0_43 = arith.constant 0 : index
    %c0_44 = arith.constant 0 : index
    %41 = vector.load %arg8[%c0_43, %c0_44] : memref<18x144xbf16, #tpu.memory_space<vmem>>, vector<16x144xbf16>
    %c0_45 = arith.constant 0 : index
    %c0_46 = arith.constant 0 : index
    %c0_47 = arith.constant 0 : index
    %42 = vector.load %arg4[%c0_45, %c0_46, %c0_47] : memref<3x144x128xbf16, #tpu.memory_space<vmem>>, vector<1x144x128xbf16>
    %43 = vector.shape_cast %42 : vector<1x144x128xbf16> to vector<144x128xbf16>
    %cst_48 = arith.constant dense<0.000000e+00> : vector<16x128xf32>
    %44 = tpu.matmul %41, %43, %cst_48 {dimension_numbers = #tpu.dot_dimension_numbers<[1], [0], [0], [1], [0, 0, 1, 1], [], []>} : vector<16x144xbf16>, vector<144x128xbf16>, vector<16x128xf32> -> vector<16x128xf32>
    %c1_49 = arith.constant 1 : index
    %c0_50 = arith.constant 0 : index
    %45 = vector.load %arg8[%c1_49, %c0_50] : memref<18x144xbf16, #tpu.memory_space<vmem>>, vector<16x144xbf16>
    %c1_51 = arith.constant 1 : index
    %c0_52 = arith.constant 0 : index
    %c0_53 = arith.constant 0 : index
    %46 = vector.load %arg4[%c1_51, %c0_52, %c0_53] : memref<3x144x128xbf16, #tpu.memory_space<vmem>>, vector<1x144x128xbf16>
    %47 = vector.shape_cast %46 : vector<1x144x128xbf16> to vector<144x128xbf16>
    %cst_54 = arith.constant dense<0.000000e+00> : vector<16x128xf32>
    %48 = tpu.matmul %45, %47, %cst_54 {dimension_numbers = #tpu.dot_dimension_numbers<[1], [0], [0], [1], [0, 0, 1, 1], [], []>} : vector<16x144xbf16>, vector<144x128xbf16>, vector<16x128xf32> -> vector<16x128xf32>
    %49 = arith.addf %44, %48 : vector<16x128xf32>
    %c2_55 = arith.constant 2 : index
    %c0_56 = arith.constant 0 : index
    %50 = vector.load %arg8[%c2_55, %c0_56] : memref<18x144xbf16, #tpu.memory_space<vmem>>, vector<16x144xbf16>
    %c2_57 = arith.constant 2 : index
    %c0_58 = arith.constant 0 : index
    %c0_59 = arith.constant 0 : index
    %51 = vector.load %arg4[%c2_57, %c0_58, %c0_59] : memref<3x144x128xbf16, #tpu.memory_space<vmem>>, vector<1x144x128xbf16>
    %52 = vector.shape_cast %51 : vector<1x144x128xbf16> to vector<144x128xbf16>
    %cst_60 = arith.constant dense<0.000000e+00> : vector<16x128xf32>
    %53 = tpu.matmul %50, %52, %cst_60 {dimension_numbers = #tpu.dot_dimension_numbers<[1], [0], [0], [1], [0, 0, 1, 1], [], []>} : vector<16x144xbf16>, vector<144x128xbf16>, vector<16x128xf32> -> vector<16x128xf32>
    %54 = arith.addf %49, %53 : vector<16x128xf32>
    %c0_61 = arith.constant 0 : index
    %c0_62 = arith.constant 0 : index
    %55 = vector.load %arg5[%c0_61, %c0_62] : memref<1x128xf32, #tpu.memory_space<vmem>>, vector<1x128xf32>
    %56 = vector.broadcast %55 : vector<1x128xf32> to vector<16x128xf32>
    %57 = arith.addf %54, %56 : vector<16x128xf32>
    %cst_63 = arith.constant 0.000000e+00 : f32
    %58 = vector.broadcast %cst_63 : f32 to vector<16x128xf32>
    %59 = arith.maximumf %57, %58 : vector<16x128xf32>
    %c0_64 = arith.constant 0 : index
    %c0_65 = arith.constant 0 : index
    %c0_66 = arith.constant 0 : index
    %60 = vector.load %arg6[%c0_64, %c0_65, %c0_66] : memref<1x16x128xf32, #tpu.memory_space<vmem>>, vector<1x16x128xf32>
    %61 = vector.shape_cast %60 : vector<1x16x128xf32> to vector<16x128xf32>
    %62 = vector.shape_cast %59 : vector<16x128xf32> to vector<1x16x128xf32>
    tpu.vector_store %arg6[%c0_64, %c0_65, %c0_66], %62 {strides = array<i32>} : memref<1x16x128xf32, #tpu.memory_space<vmem>>, vector<1x16x128xf32>,
    return
  }
  func.func @transform_0(%arg0: i32) -> (i32, i32, i32) {
    %c0_i32 = arith.constant 0 : i32
    %c0_i32_0 = arith.constant 0 : i32
    %c0_i32_1 = arith.constant 0 : i32
    return %arg0, %c0_i32, %c0_i32_0 : i32, i32, i32
  }
  func.func @transform_1(%arg0: i32) -> (i32, i32, i32) {
    %c0_i32 = arith.constant 0 : i32
    %c0_i32_0 = arith.constant 0 : i32
    %c0_i32_1 = arith.constant 0 : i32
    %c0_i32_2 = arith.constant 0 : i32
    return %c0_i32, %c0_i32_0, %c0_i32_1 : i32, i32, i32
  }
  func.func @transform_2(%arg0: i32) -> (i32, i32) {
    %c0_i32 = arith.constant 0 : i32
    %c0_i32_0 = arith.constant 0 : i32
    %c0_i32_1 = arith.constant 0 : i32
    return %c0_i32, %c0_i32_0 : i32, i32
  }
  func.func @transform_3(%arg0: i32) -> (i32, i32, i32) {
    %c0_i32 = arith.constant 0 : i32
    %c0_i32_0 = arith.constant 0 : i32
    %c0_i32_1 = arith.constant 0 : i32
    %c0_i32_2 = arith.constant 0 : i32
    return %c0_i32, %c0_i32_0, %c0_i32_1 : i32, i32, i32
  }
  func.func @transform_4(%arg0: i32) -> (i32, i32) {
    %c0_i32 = arith.constant 0 : i32
    %c0_i32_0 = arith.constant 0 : i32
    %c0_i32_1 = arith.constant 0 : i32
    return %c0_i32, %c0_i32_0 : i32, i32
  }
  func.func @transform_5(%arg0: i32) -> (i32, i32, i32) {
    %c0_i32 = arith.constant 0 : i32
    %c0_i32_0 = arith.constant 0 : i32
    %c0_i32_1 = arith.constant 0 : i32
    return %arg0, %c0_i32, %c0_i32_0 : i32, i32, i32
  }
}

</mosaic_0001>

<bundles_post_ra>
// kernel: tile.13
= control target key start
LH: loop header
LB: loop body
LE: loop exit
PB: predicated region body
PF: predicated region fallthrough
CT: control target
= control target key end

     0   :  { %s28_s0 = inlined_call_operand.vmem [shape: f32[8], index: 0, kind: input, shape index: {}]   ;;  %s29_s1 = inlined_call_operand.vmem [shape: f32[16,8], index: 1, kind: output, shape index: {}]  }
   0x1   :  { %v4_v0 = vld [vmem:[%s28_s0] ss:$0 sm:$0xff] }
   0x2   :  { %5 = vst [vmem:[%s29_s1] sm:$0xff] %v4_v0  ;;  %8 = vst [vmem:[%s29_s1 + $0x8] sm:$0xff] %v4_v0 }

// kernel: tile.14
= control target key start
LH: loop header
LB: loop body
LE: loop exit
PB: predicated region body
PF: predicated region fallthrough
CT: control target
= control target key end

     0   :  { %s131_s10 = smov 120   ;;  %s132_s11 = smov 104   ;;  %vm3_vm0 = vcmask 64512   ;;  %vm9_vm1 = vcmask 1048512   ;;  %vm15_vm2 = vcmask 982912   ;;  %vm21_vm3 = vcmask 917312   ;;  %s207_s0 = inlined_call_operand.vmem [shape: f32[16,8], index: 0, kind: input, shape index: {}]   ;;  %s208_s1 = inlined_call_operand.vmem [shape: f32[1,128], index: 1, kind: output, shape index: {}]  }
   0x1   :  { %v101_v0 = vld [vmem:[%s207_s0 + $0xf] sm:$0x1]   ;;  %v103_v1 = vld [vmem:[%s207_s0 + $0xd] sm:$0x1]   ;;  %v102_v2 = vld [vmem:[%s207_s0 + $0xe] sm:$0x1]  }
   0x2   :  { %7 = vrot.lane.b32.xlu0 %v101_v0, %s131_s10  ;;  %19 = vrot.lane.b32.xlu1 %v103_v1, %s132_s11  ;;  %v104_v3 = vld [vmem:[%s207_s0 + $0xc] sm:$0x1]   ;;  %s133_s16 = smov 112   ;;  %s134_s17 = smov 96   ;;  %v105_v4 = vld [vmem:[%s207_s0 + $0xb] sm:$0x1]  }
   0x3   :  { %v106_v5 = vld [vmem:[%s207_s0 + $0xa] sm:$0x1]   ;;  %v2_v6 = vld [vmem:[%s207_s0] sm:$0x1]   ;;  %s135_s24 = smov 88   ;;  %s136_s25 = smov 80  }
   0x4   :  { %4 = vst.msk [vmem:[#allocation0] sm:$0x1] %vm3_vm0, %v2_v6   ;;  %v107_v7 = vld [vmem:[%s207_s0 + $0x9] sm:$0x1]   ;;  %v108_v8 = vld [vmem:[%s207_s0 + $0x8] sm:$0x1]  }
   0x5   :  { %s137_s30 = smov 72   ;;  %s138_s2 = smov 64   ;;  %v109_v9 = vld [vmem:[%s207_s0 + $0x7] sm:$0x1]   ;;  %v110_v10 = vld [vmem:[%s207_s0 + $0x6] sm:$0x1]  }
   0x6   :  { %13 = vrot.lane.b32.xlu0 %v102_v2, %s133_s16  ;;  %25 = vrot.lane.b32.xlu1 %v104_v3, %s134_s17  ;;  %s139_s7 = smov 56   ;;  %s140_s8 = smov 48   ;;  %v111_v11 = vld [vmem:[%s207_s0 + $0x5] sm:$0x1]   ;;  %v112_v12 = vld [vmem:[%s207_s0 + $0x4] sm:$0x1]  }
   0x7   :  { %s141_s13 = smov 40   ;;  %s142_s14 = smov 32   ;;  %v113_v13 = vld [vmem:[%s207_s0 + $0x3] sm:$0x1]   ;;  %v114_v14 = vld [vmem:[%s207_s0 + $0x2] sm:$0x1]  }
   0x8   :  { %s143_s19 = smov 24   ;;  %s144_s20 = smov 16   ;;  %v115_v15 = vld [vmem:[%s207_s0 + $0x1] sm:$0x1]   ;;  %vm27_vm4 = vcmask 851712   ;;  %vm33_vm5 = vcmask 786112  }
   0x9   :  { %s145_s0 = smov 8   ;;  %vm39_vm6 = vcmask 720512   ;;  %vm45_vm7 = vcmask 654912   ;;  %vm51_vm8 = vcmask 589312   ;;  %vm57_vm9 = vcmask 523712  }
   0xa   :  { %31 = vrot.lane.b32.xlu0 %v105_v4, %s135_s24  ;;  %37 = vrot.lane.b32.xlu1 %v106_v5, %s136_s25  ;;  %vm63_vm10 = vcmask 458112   ;;  %vm69_vm11 = vcmask 392512   ;;  %vm75_vm12 = vcmask 326912   ;;  %vm81_vm13 = vcmask 261312  }
   0xb   :  { %vm87_vm14 = vcmask 195712   ;;  %vm93_vm15 = vcmask 130112  }
   0xe   :  { %43 = vrot.lane.b32.xlu0 %v107_v7, %s137_s30  ;;  %49 = vrot.lane.b32.xlu1 %v108_v8, %s138_s2 }
  0x12   :  { %55 = vrot.lane.b32.xlu0 %v109_v9, %s139_s7  ;;  %61 = vrot.lane.b32.xlu1 %v110_v10, %s140_s8 }
  0x16   :  { %67 = vrot.lane.b32.xlu0 %v111_v11, %s141_s13  ;;  %73 = vrot.lane.b32.xlu1 %v112_v12, %s142_s14 }
  0x1a   :  { %79 = vrot.lane.b32.xlu0 %v113_v13, %s143_s19  ;;  %85 = vrot.lane.b32.xlu1 %v114_v14, %s144_s20 }
  0x1e   :  { %91 = vrot.lane.b32.xlu0 %v115_v15, %s145_s0 }
  0x74   :  { %v8_v16 = vpop.permute.xlu0 %7   ;;  %v20_v17 = vpop.permute.xlu1 %19  }
  0x75   :  { %10 = vst.msk [vmem:[#allocation0] sm:$0x1] %vm9_vm1, %v8_v16  }
  0x78   :  { %v14_v18 = vpop.permute.xlu0 %13   ;;  %v26_v19 = vpop.permute.xlu1 %25  }
  0x79   :  { %16 = vst.msk [vmem:[#allocation0] sm:$0x1] %vm15_vm2, %v14_v18  }
  0x7a   :  { %22 = vst.msk [vmem:[#allocation0] sm:$0x1] %vm21_vm3, %v20_v17  }
  0x7b   :  { %28 = vst.msk [vmem:[#allocation0] sm:$0x1] %vm27_vm4, %v26_v19  }
  0x7c   :  { %v32_v20 = vpop.permute.xlu0 %31   ;;  %v38_v21 = vpop.permute.xlu1 %37  }
  0x7d   :  { %34 = vst.msk [vmem:[#allocation0] sm:$0x1] %vm33_vm5, %v32_v20  }
  0x7e   :  { %40 = vst.msk [vmem:[#allocation0] sm:$0x1] %vm39_vm6, %v38_v21  }
  0x80   :  { %v44_v22 = vpop.permute.xlu0 %43   ;;  %v50_v23 = vpop.permute.xlu1 %49  }
  0x81   :  { %46 = vst.msk [vmem:[#allocation0] sm:$0x1] %vm45_vm7, %v44_v22  }
  0x82   :  { %52 = vst.msk [vmem:[#allocation0] sm:$0x1] %vm51_vm8, %v50_v23  }
  0x84   :  { %v56_v24 = vpop.permute.xlu0 %55   ;;  %v62_v25 = vpop.permute.xlu1 %61  }
  0x85   :  { %58 = vst.msk [vmem:[#allocation0] sm:$0x1] %vm57_vm9, %v56_v24  }
  0x86   :  { %64 = vst.msk [vmem:[#allocation0] sm:$0x1] %vm63_vm10, %v62_v25  }
  0x88   :  { %v68_v26 = vpop.permute.xlu0 %67   ;;  %v74_v27 = vpop.permute.xlu1 %73  }
  0x89   :  { %70 = vst.msk [vmem:[#allocation0] sm:$0x1] %vm69_vm11, %v68_v26  }
  0x8a   :  { %76 = vst.msk [vmem:[#allocation0] sm:$0x1] %vm75_vm12, %v74_v27  }
  0x8c   :  { %v80_v28 = vpop.permute.xlu0 %79   ;;  %v86_v29 = vpop.permute.xlu1 %85  }
  0x8d   :  { %82 = vst.msk [vmem:[#allocation0] sm:$0x1] %vm81_vm13, %v80_v28  }
  0x8e   :  { %88 = vst.msk [vmem:[#allocation0] sm:$0x1] %vm87_vm14, %v86_v29  }
  0x90   :  { %v92_v30 = vpop.permute.xlu0 %91  }
  0x91   :  { %94 = vst.msk [vmem:[#allocation0] sm:$0x1] %vm93_vm15, %v92_v30  }
  0x98   :  { %v98_v31 = vld [vmem:[#allocation0] sm:$0x1] }
  0x99   :  { %100 = vst [vmem:[%s208_s1] sm:$0x1] %v98_v31 }

// kernel: double_convolver.1
= control target key start
LH: loop header
LB: loop body
LE: loop exit
PB: predicated region body
PF: predicated region fallthrough
CT: control target
= control target key end

     0   :  { %s1479_s18 = smov 0   ;;  %s1775_s0 = inlined_call_operand.vmem [shape: f32[2,16,64], index: 0, kind: input, shape index: {}]   ;;  %s1776_s1 = inlined_call_operand.vmem [shape: bf16[3,72,128], index: 1, kind: input, shape index: {}]   ;;  %s1777_s2 = inlined_call_operand.vmem [shape: f32[1,128], index: 2, kind: input, shape index: {}]   ;;  %s1778_s3 = inlined_call_operand.vmem [shape: bf16[3,144,128], index: 3, kind: input, shape index: {}]   ;;  %s1779_s4 = inlined_call_operand.vmem [shape: f32[1,128], index: 4, kind: input, shape index: {}]   ;;  %s1780_s5 = inlined_call_operand.vmem [shape: f32[2,16,128], index: 5, kind: output, shape index: {}]  }
   0x1 LB: > { %s1180_s19 = sadd.s32 4294967295, %s1442_s18   ;;  %p1184_p0 = scmp.ge.s32.totalorder %s1442_s18, 1  ;;  %s1442_s18 = sphi %s1479_s18, %s15_s18  }
   0x2   : > { %p187_p1 = scmp.lt.s32.totalorder %s1442_s18, 3 }
   0x4   : > { %p188_p2 = pnand %p1184_p0, %p187_p1 }
   0x5   : > { %p215_p3 = scmp.lt.s32.totalorder (!%p188_p2), %s1180_s19, 1  ;;  %vm227_vm0 = vsmask.f32 (!%p188_p2), 256  ;;  %vm226_vm1 = vcmask (!%p188_p2), 581632   ;;  %v1444_v0 = vmov (!%p188_p2), 0.0   ;;  %v1387_v1 = vld [vmem:[%s1776_s1] sm:$0xff] (!%p188_p2)  }
   0x6   : > { %191 = sbr.rel (%p188_p2) target bundleno = 803 (0x323), region = 40  ;;  %1346 = vmatprep.subr.bf16.mxu1 (!%p188_p2), %v1444_v0  ;;  %1332 = vmatprep.subr.bf16.mxu0 (!%p188_p2), %v1444_v0  ;;  %v1388_v2 = vld [vmem:[%s1776_s1 + $0x8] sm:$0xff] (!%p188_p2)   ;;  %vm228_vm2 = vmand (!%p188_p2), %vm226_vm1, %vm227_vm0  ;;  %v229_v3 = vld [vmem:[#allocation2] sm:$0x1] (!%p188_p2)  ;;  %vm232_vm3 = vsmask.f32 (!%p188_p2), 7938 }
   0x7   : > { %1347 = vmatpush3.bf16.msra.mxu1 (!%p188_p2), %v1387_v1  ;;  %v230_v4 = vsel (!%p188_p2), %vm228_vm2, 0, %v229_v3  ;;  %v1389_v5 = vld [vmem:[%s1776_s1 + $0x24] sm:$0xff] (!%p188_p2)   ;;  %vm237_vm4 = vcmask (!%p188_p2), 27648   ;;  %vm249_vm5 = vcmask (!%p188_p2), 585248   ;;  %vm1511_vm6 = vmand (!%p188_p2), %vm226_vm1, %vm232_vm3  ;;  %v1445_v12 = vmov (!%p188_p2), 0   ;;  %v1390_v14 = vld [vmem:[%s1776_s1 + $0x10] sm:$0xff] (!%p188_p2)  }
   0x8   : > { %1348 = vmatprep.subr.bf16.mxu1 (!%p188_p2), %v1444_v0  ;;  %231 = vst [vmem:[#allocation2] sm:$0x1] (!%p188_p2), %v230_v4  ;;  %1333 = vmatpush3.bf16.msra.mxu0 (!%p188_p2), %v1389_v5  ;;  %v234_v11 = vld [vmem:[#allocation2 + $0x8] sm:$0x1] (!%p188_p2)  ;;  %243 = vst.msk [vmem:[#allocation2 + $0x4] sm:$0xf] (!%p188_p2), %vm237_vm4, %v1445_v12 }
   0x9   : > { %vm1446_vm7 = vmmov (!%p188_p2), 0   ;;  %v235_v13 = vsel (!%p188_p2), %vm1511_vm6, 0, %v234_v11  ;;  %255 = vst.msk [vmem:[#allocation2 + $0x4] sm:$0xf] (!%p188_p2), %vm249_vm5, %v1445_v12  ;;  %1334 = vmatprep.subr.bf16.mxu0 (!%p188_p2), %v1444_v0  ;;  %vm309_vm8 = vsmask.f32 (!%p188_p2), 4368  ;;  %vm1535_vm10 = vmand (!%p188_p2), %vm237_vm4, %vm232_vm3 }
   0xa   : > { %1356 = vmatprep.mubr.msk.bf16.mxu1 (!%p188_p2), %vm1446_vm7, %v1444_v0  ;;  %236 = vst [vmem:[#allocation2 + $0x8] sm:$0x1] (!%p188_p2), %v235_v13  ;;  %1342 = vmatprep.mubr.msk.bf16.mxu0 (!%p188_p2), %vm1446_vm7, %v1444_v0  ;;  %vm244_vm9 = vcmask (!%p188_p2), 24576   ;;  %v1391_v19 = vld [vmem:[%s1776_s1 + $0x2c] sm:$0xff] (!%p188_p2)   ;;  %v1392_v24 = vld [vmem:[%s1776_s1 + $0x18] sm:$0xff] (!%p188_p2)   ;;  %vm1543_vm11 = vmor (!%p188_p2), %vm227_vm0, %vm309_vm8  ;;  %vm423_vm13 = vcmask (!%p188_p2), 1043456  }
   0xb   : > { %1349 = vmatpush3.bf16.msra.mxu1 (!%p188_p2), %v1388_v2  ;;  %v1393_v30 = vld [vmem:[%s1776_s1 + $0x34] sm:$0xff] (!%p188_p2)   ;;  %vm1556_vm12 = vmand (!%p188_p2), %vm244_vm9, %vm227_vm0  ;;  %v1394_v33 = vld [vmem:[%s1776_s1 + $0x20] ss:$0 sps:$4 sm:$0xff] (!%p188_p2)   ;;  %s1447_s15 = smov (!%p188_p2), 4   ;;  %vm256_vm15 = vcmask (!%p188_p2), 582176   ;;  %vm337_vm2 = vcmask (!%p188_p2), 551968  }
   0xc   : > { %1350 = vmatprep.subr.bf16.mxu1 (!%p188_p2), %v1444_v0  ;;  %1335 = vmatpush3.bf16.msra.mxu0 (!%p188_p2), %v1391_v19  ;;  %v1395_v36 = vld [vmem:[%s1776_s1 + $0x3c] sm:$0xff] (!%p188_p2)   ;;  %v498_v38 = vsel (!%p188_p2), %vm423_vm13, %v1394_v33, 0  ;;  %v1398_v39 = vld [vmem:[%s1776_s1 + $0x44] ss:$0 sps:$4 sm:$0xff] (!%p188_p2)   ;;  %vm250_vm14 = vmand (!%p188_p2), %vm249_vm5, %vm232_vm3  ;;  %vm344_vm4 = vcmask (!%p188_p2), 548896   ;;  %vm419_vm8 = vcmask (!%p188_p2), 588800  }
   0xd   : > { %s1792_s19 = smov (!%p215_p3, %s1180_s19), 1  ;;  %1336 = vmatprep.subr.bf16.mxu0 %v1444_v0  ;;  %v425_v40 = vsel %vm423_vm13, %v1398_v39, 0  ;;  %vm257_vm1 = vmand %vm256_vm15, %vm227_vm0  ;;  %vm379_vm9 = vsmask.f32 7424  ;;  %v1400_v62 = vld [vmem:[%s1776_s1 + $0x48] sm:$0xff]   ;;  %v1401_v1 = vld [vmem:[%s1776_s1 + $0x50] sm:$0xff]  }
   0xe   : > { %s1308_s24 = sshll.u32 %s1792_s19, 4  ;;  %vm338_vm5 = vmand %vm337_vm2, %vm232_vm3  ;;  %v1402_v2 = vld [vmem:[%s1776_s1 + $0x58] sm:$0xff]   ;;  %v1403_v3 = vld [vmem:[%s1776_s1 + $0x60] sm:$0xff]   ;;  %s1448_s25 = smov 8  }
   0xf   : > { %s219_s27 = scalar_lea.vmem %s1775_s0, %s1308_s24  ;;  %v239_v23 = vld [vmem:[#allocation2] sm:$0xf]  ;;  %1351 = vmatpush3.bf16.msra.mxu1 %v1390_v14  ;;  %vm345_vm6 = vmand %vm344_vm4, %vm227_vm0  ;;  %v1404_v5 = vld [vmem:[%s1776_s1 + $0x68] ss:$0 sps:$4 sm:$0xff]   ;;  %vm271_vm4 = vsmask.f32 7954  ;;  %s224_s28 = scalar_lea.vmem %s1780_s5, %s1308_s24 }
  0x10   : > { %v301_v6 = vld [vmem:[%s219_s27] sm:$0xff]  ;;  %v302_v7 = vld [vmem:[%s219_s27 + $0x8] sm:$0xff]  ;;  %1352 = vmatprep.subr.bf16.mxu1 %v1444_v0  ;;  %v240_v31 = vsel %vm1535_vm10, 0, %v239_v23  ;;  %1337 = vmatpush3.bf16.msra.mxu0 %v1393_v30  ;;  %vm261_vm10 = vcmask 1040384   ;;  %v1409_v14 = vld [vmem:[%s1778_s3 + $0x50] sm:$0xff]  }
  0x11   : > { %v1310_v8 = vpack.c.bf16 %v301_v6, %v301_v6  ;;  %v1311_v9 = vpack.c.bf16 %v302_v7, %v302_v7  ;;  %241 = vst [vmem:[#allocation2] sm:$0xf] %v240_v31  ;;  %v246_v35 = vld [vmem:[#allocation2 + $0x8] sm:$0x1]  ;;  %1338 = vmatprep.subr.bf16.mxu0 %v1444_v0  ;;  %v590_v7 = vsel %vm423_vm13, %v1404_v5, 0  ;;  %v1405_v11 = vld [vmem:[%s1778_s3] sm:$0xff]   ;;  %vm262_vm15 = vmand %vm261_vm10, %vm227_vm0 }
  0x12   : > { %v247_v37 = vsel %vm1556_vm12, 0, %v246_v35  ;;  %vm263_vm12 = vcmask 126980   ;;  %vm277_vm13 = vcmask 60416   ;;  %v1406_v13 = vld [vmem:[%s1778_s3 + $0x8] sm:$0xff]   ;;  %v1411_v19 = vld [vmem:[%s1778_s3 + $0x58] sm:$0xff]  }
  0x13   : > { %v312_v15 = vshrl.u32 %v1310_v8, 16  ;;  %v315_v16 = vshll.u32 %v1310_v8, 16  ;;  %v320_v17 = vshrl.u32 %v1311_v9, 16  ;;  %v323_v18 = vshll.u32 %v1311_v9, 16  ;;  %1353 = vmatpush3.bf16.msra.mxu1 %v1392_v24  ;;  %248 = vst [vmem:[#allocation2 + $0x8] sm:$0x1] %v247_v37 }
  0x14   : > { %1354 = vmatprep.subr.bf16.mxu1 %v1444_v0  ;;  %1339 = vmatpush3.bf16.msra.mxu0 %v1395_v36  ;;  %283 = vst.msk [vmem:[#allocation3 + $0x8] sm:$0xf] %vm277_vm13, %v1445_v12  ;;  %v1412_v24 = vld [vmem:[%s1778_s3 + $0x20] sm:$0xff]  }
  0x15   : > { %v314_v20 = vrot.slane %v312_v15, 7  ;;  %v322_v21 = vrot.slane %v320_v17, 7  ;;  %1340 = vmatprep.subr.bf16.mxu0 %v1444_v0  ;;  %v267_v15 = vld [vmem:[#allocation3] sm:$0x11]  ;;  %v274_v17 = vld [vmem:[#allocation3 + $0x10] sm:$0x11] }
  0x17   : > { %v317_v25 = vor.u32 %v315_v16, %v314_v20  ;;  %v318_v26 = vrot.slane %v314_v20, 4  ;;  %v327_v27 = vrot.slane %v322_v21, 4  ;;  %v325_v28 = vor.u32 %v323_v18, %v322_v21  ;;  %1355 = vmatpush3.bf16.msra.mxu1 %v498_v38  ;;  %v1408_v18 = vld [vmem:[%s1778_s3 + $0x10] sm:$0xff]   ;;  %v1410_v21 = vld [vmem:[%s1778_s3 + $0x18] sm:$0xff]  }
  0x18   : > { %841 = vmatprep.subr.bf16.mxu1 %v1445_v12  ;;  %v251_v41 = vld [vmem:[#allocation2] sm:$0xf]  ;;  %1341 = vmatpush3.bf16.msra.mxu0 %v425_v40 }
  0x19   : > { %328 = vrot.lane.b32.xlu0 %v317_v25, %s1447_s15  ;;  %332 = vrot.lane.b32.xlu1 %v327_v27, %s1447_s15  ;;  %v326_v34 = vsel %vm1543_vm11, %v318_v26, %v325_v28  ;;  %v252_v42 = vsel %vm250_vm14, 0, %v251_v41  ;;  %vm264_vm14 = vsmask.f32 4352 }
  0x1a   : > { %253 = vst [vmem:[#allocation2] sm:$0xf] %v252_v42  ;;  %v258_v43 = vld [vmem:[#allocation2 + $0x8] sm:$0x1]  ;;  %1360 = vmatprep.subr.bf16.mxu0 %v1444_v0 }
  0x1b   : > { %v259_v44 = vsel %vm257_vm1, 0, %v258_v43  ;;  %vm289_vm1 = vcmask 126016   ;;  %v1230_v43 = vld [vmem:[%s1777_s2] ss:$0 sm:$0xff] }
  0x1c   : > { %260 = vst [vmem:[#allocation2 + $0x8] sm:$0x1] %v259_v44  ;;  %295 = vst.msk [vmem:[#allocation3 + $0xc] sm:$0xf] %vm289_vm1, %v1445_v12  ;;  %v1413_v44 = vld [vmem:[%s1778_s3 + $0x60] sm:$0xff]  }
  0x1d   : > { %330 = vrot.lane.b32.xlu0 %v326_v34, %s1447_s15 }
  0x21   : > { %v339_v45 = vld [vmem:[#allocation2] sm:$0xf] }
  0x23   : > { %v346_v46 = vld [vmem:[#allocation2 + $0x8] sm:$0x1] }
  0x8b   : > { %v329_v47 = vpop.permute.xlu0 %328  ;;  %v333_v48 = vpop.permute.xlu1 %332 }
  0x8c   : > { %v340_v49 = vsel %vm338_vm5, %v329_v47, %v339_v45  ;;  %v347_v50 = vsel %vm345_vm6, %v333_v48, %v346_v46  ;;  %vm270_vm6 = vmand %vm261_vm10, %vm232_vm3  ;;  %v1414_v48 = vld [vmem:[%s1778_s3 + $0x28] sm:$0xff]  }
  0x8d   : > { %341 = vst [vmem:[#allocation2] sm:$0xf] %v340_v49  ;;  %348 = vst [vmem:[#allocation2 + $0x8] sm:$0x1] %v347_v50 }
  0x8f   : > { %v331_v51 = vpop.permute.xlu0 %330 }
  0x90   : > { %343 = vst.msk [vmem:[#allocation2 + $0x4] sm:$0xf] %vm337_vm2, %v331_v51  ;;  %vm265_vm2 = vmand %vm263_vm12, %vm264_vm14 }
  0x91   : > { %vm266_vm5 = vmor %vm265_vm2, %vm262_vm15  ;;  %vm284_vm2 = vcmask 57344  }
  0x92   : > { %v268_v16 = vsel %vm266_vm5, 0, %v267_v15  ;;  %vm278_vm15 = vmand %vm277_vm13, %vm232_vm3  ;;  %vm296_vm5 = vcmask 122944  }
  0x93   : > { %269 = vst [vmem:[#allocation3] sm:$0x11] %v268_v16  ;;  %vm297_vm13 = vmand %vm296_vm5, %vm227_vm0 }
  0x94   : > { %v1399_v52 = vld [vmem:[#allocation2 + $0x8] ss:$0 sps:$4 sm:$0x11]   ;;  %v349_v53 = vld [vmem:[#allocation2] sm:$0xf] }
  0x95   : > { %v388_v56 = vshll.u32 %v1399_v52, 16  ;;  %v541_v4 = vld [vmem:[#allocation2] sm:$0xe]  ;;  %v557_v9 = vrot.slane %v1399_v52, 1  ;;  %v1415_v52 = vld [vmem:[%s1778_s3 + $0x68] sm:$0xff]  }
  0x97   : > { %v350_v54 = vld [vmem:[#allocation2 + $0x4] sm:$0xf]  ;;  %v390_v60 = vrot.slane %v388_v56, 1 }
  0x98   : > { %v1200_v55 = vcombine.low %v349_v53, %v350_v54  ;;  %v1223_v6 = vcombine.low %v541_v4, %v350_v54 }
  0x9a   : > { %1357 = vmatmul.mubr.msk.bf16.vlgmr.msra.gmra.mrb[0].mxu1 %vm419_vm8, %v1200_v55  ;;  %v383_v57 = vshll.u32 %v1200_v55, 16  ;;  %v381_v58 = vshrl.u32 %v1200_v55, 16  ;;  %v556_v8 = vrot.slane %v1223_v6, 1  ;;  %v279_v22 = vld [vmem:[#allocation3] sm:$0xf]  ;;  %v1416_v55 = vld [vmem:[%s1778_s3 + $0x30] sm:$0xff]  }
  0x9b   : > { %v291_v23 = vld [vmem:[#allocation3 + $0x4] sm:$0xf]  ;;  %v280_v25 = vsel %vm278_vm15, 0, %v279_v22  ;;  %vm697_vm15 = vcmask 1040448  }
  0x9c   : > { %v385_v59 = vrot.slane %v383_v57, 1  ;;  %281 = vst [vmem:[#allocation3] sm:$0xf] %v280_v25 }
  0x9e   : > { %v386_v61 = vor.u32 %v385_v59, %v381_v58  ;;  %v1417_v58 = vld [vmem:[%s1778_s3 + $0x70] sm:$0xff]  }
  0xa0   : > { %v391_v63 = vsel %vm379_vm9, %v386_v61, %v390_v60  ;;  %v1418_v61 = vld [vmem:[%s1778_s3 + $0x38] sm:$0xff]  }
  0xa1   : > { %1343 = vmatmul.mubr.msk.bf16.vlgmr.msra.gmra.mrb[0].mxu0 %vm419_vm8, %v391_v63 }
  0xa2   : > { %1361 = vmatpush3.bf16.msra.mxu0 %v1400_v62  ;;  %1370 = vmatprep.mubr.msk.bf16.mxu0 %vm1446_vm7, %v1444_v0  ;;  %vm555_vm7 = vcmask 1046528   ;;  %v1419_v62 = vld [vmem:[%s1778_s3 + $0x78] sm:$0xff]  }
  0xa3   : > { %1362 = vmatprep.subr.bf16.mxu0 %v1444_v0  ;;  %v558_v10 = vsel %vm555_vm7, %v556_v8, %v557_v9 }
  0xa6   : > { %1363 = vmatpush3.bf16.msra.mxu0 %v1401_v1 }
  0xa7   : > { %1364 = vmatprep.subr.bf16.mxu0 %v1444_v0 }
  0xaa   : > { %1365 = vmatpush3.bf16.msra.mxu0 %v1402_v2 }
  0xab   : > { %1366 = vmatprep.subr.bf16.mxu0 %v1444_v0 }
  0xae   : > { %1367 = vmatpush3.bf16.msra.mxu0 %v1403_v3  ;;  %v1420_v3 = vld [vmem:[%s1778_s3 + $0x40] sm:$0xff]  }
  0xaf   : > { %1368 = vmatprep.subr.bf16.mxu0 %v1444_v0  ;;  %v1407_v0 = vld [vmem:[%s1778_s3 + $0x48] sm:$0xff]  }
  0xb0   : > { %842 = vmatpush1.bf16.msra.mxu1 %v1407_v0  ;;  %v1422_v0 = vld [vmem:[%s1778_s3 + $0x88] sm:$0xff]  }
  0xb1   : > { %843 = vmatprep.subr.bf16.mxu1 %v1445_v12 }
  0xb2   : > { %1369 = vmatpush3.bf16.msra.mxu0 %v590_v7  ;;  %v1421_v7 = vld [vmem:[%s1778_s3 + $0x80] sm:$0xff]  }
  0xb3   : > { %939 = vmatprep.subr.bf16.mxu0 %v1445_v12 }
  0xb4   : > { %844 = vmatpush1.bf16.msra.mxu1 %v1409_v14 }
  0xb5   : > { %1371 = vmatmul.mubr.msk.bf16.vlgmr.msra.gmra.mrb[4].mxu0 %vm419_vm8, %v558_v10  ;;  %vm272_vm8 = vmand %vm263_vm12, %vm271_vm4  ;;  %845 = vmatprep.subr.bf16.mxu1 %v1445_v12 }
  0xb6   : > { %940 = vmatpush1.bf16.msra.mxu0 %v1405_v11  ;;  %vm273_vm10 = vmor %vm272_vm8, %vm270_vm6  ;;  %vm687_vm8 = vcmask 64516  }
  0xb7   : > { %941 = vmatprep.subr.bf16.mxu0 %v1445_v12  ;;  %v275_v20 = vsel %vm273_vm10, 0, %v274_v17  ;;  %vm290_vm12 = vmand %vm289_vm1, %vm232_vm3  ;;  %vm685_vm1 = vcmask 1043520  }
  0xb8   : > { %276 = vst [vmem:[#allocation3 + $0x10] sm:$0x11] %v275_v20  ;;  %846 = vmatpush1.bf16.msra.mxu1 %v1411_v19  ;;  %vm285_vm6 = vmand %vm284_vm2, %vm227_vm0  ;;  %v292_v26 = vsel %vm290_vm12, 0, %v291_v23  ;;  %vm699_vm2 = vcmask 61444   ;;  %vm678_vm12 = vcmask 64512  }
  0xb9   : > { %847 = vmatprep.subr.bf16.mxu1 %v1445_v12  ;;  %293 = vst [vmem:[#allocation3 + $0x4] sm:$0xf] %v292_v26  ;;  %vm686_vm10 = vmand %vm685_vm1, %vm232_vm3 }
  0xba   : > { %942 = vmatpush1.bf16.msra.mxu0 %v1406_v13  ;;  %vm695_vm3 = vmor %vm687_vm8, %vm685_vm1 }
  0xbb   : > { %943 = vmatprep.subr.bf16.mxu0 %v1445_v12 }
  0xbc   : > { %848 = vmatpush1.bf16.msra.mxu1 %v1413_v44 }
  0xbd   : > { %849 = vmatprep.subr.bf16.mxu1 %v1445_v12 }
  0xbe   : > { %944 = vmatpush1.bf16.msra.mxu0 %v1408_v18 }
  0xbf   : > { %945 = vmatprep.subr.bf16.mxu0 %v1445_v12  ;;  %v286_v27 = vld [vmem:[#allocation3 + $0x10] sm:$0x1]  ;;  %v298_v28 = vld [vmem:[#allocation3 + $0x14] sm:$0x1] }
  0xc0   : > { %v287_v30 = vsel %vm285_vm6, 0, %v286_v27  ;;  %v299_v31 = vsel %vm297_vm13, 0, %v298_v28  ;;  %850 = vmatpush1.bf16.msra.mxu1 %v1415_v52  ;;  %v690_v13 = vld [vmem:[#allocation3] sm:$0xff]  ;;  %vm1711_vm6 = vmand %vm697_vm15, %vm227_vm0  ;;  %vm837_vm0 = vcmask 130048  }
  0xc1   : > { %288 = vst [vmem:[#allocation3 + $0x10] sm:$0x1] %v287_v30  ;;  %300 = vst [vmem:[#allocation3 + $0x14] sm:$0x1] %v299_v31  ;;  %851 = vmatprep.subr.bf16.mxu1 %v1445_v12 }
  0xc2   : > { %946 = vmatpush1.bf16.msra.mxu0 %v1410_v21  ;;  %vm700_vm13 = vmand %vm699_vm2, %vm264_vm14 }
  0xc3   : > { %947 = vmatprep.subr.bf16.mxu0 %v1445_v12 }
  0xc4   : > { %852 = vmatpush1.bf16.msra.mxu1 %v1417_v58  ;;  %v1432_v58 = vld [vmem:[%s1778_s3 + $0xc0] sm:$0xff]  }
  0xc5   : > { %853 = vmatprep.subr.bf16.mxu1 %v1445_v12 }
  0xc6   : > { %948 = vmatpush1.bf16.msra.mxu0 %v1412_v24 }
  0xc7   : > { %949 = vmatprep.subr.bf16.mxu0 %v1445_v12 }
  0xc8   : > { %854 = vmatpush1.bf16.msra.mxu1 %v1419_v62  ;;  %v702_v21 = vld [vmem:[#allocation3 + $0x10] sm:$0x11] }
  0xc9   : > { %855 = vmatprep.subr.bf16.mxu1 %v1445_v12 }
  0xca   : > { %950 = vmatpush1.bf16.msra.mxu0 %v1414_v48  ;;  %v1425_v48 = vld [vmem:[%s1778_s3 + $0x90] sm:$0xff]  }
  0xcb   : > { %951 = vmatprep.subr.bf16.mxu0 %v1445_v12 }
  0xcc   : > { %856 = vmatpush1.bf16.msra.mxu1 %v1421_v7 }
  0xcd   : > { %857 = vmatprep.subr.bf16.mxu1 %v1445_v12 }
  0xce   : > { %952 = vmatpush1.bf16.msra.mxu0 %v1416_v55  ;;  %v1429_v55 = vld [vmem:[%s1778_s3 + $0xa8] sm:$0xff]  }
  0xcf   : > { %953 = vmatprep.subr.bf16.mxu0 %v1445_v12 }
  0xd0   : > { %858 = vmatpush1.bf16.msra.mxu1 %v1422_v0 }
  0xd1   : > { %1069 = vmatprep.subr.bf16.mxu1 %v1445_v12 }
  0xd2   : > { %954 = vmatpush1.bf16.msra.mxu0 %v1418_v61 }
  0xd3   : > { %955 = vmatprep.subr.bf16.mxu0 %v1445_v12 }
  0xd6   : > { %956 = vmatpush1.bf16.msra.mxu0 %v1420_v3 }
 0x16d   : > { %v534_v32 = vpop.f32.mrb[0].mxu1 }
 0x16e   : > { %v1358_v33 = vpop.f32.mrb[1].mxu1 }
 0x16f   : > { %v537_v34 = vpop.f32.mrb[2].mxu1 }
 0x170   : > { %v1359_v35 = vpop.f32.mrb[3].mxu1 }
 0x174   : > { %v461_v36 = vpop.f32.mrb[0].mxu0 }
 0x175   : > { %v535_v37 = vadd.f32 %v534_v32, %v461_v36  ;;  %v1344_v38 = vpop.f32.mrb[1].mxu0 }
 0x176   : > { %v464_v39 = vpop.f32.mrb[2].mxu0 }
 0x177   : > { %v538_v40 = vadd.f32 %v537_v34, %v464_v39  ;;  %v1345_v41 = vpop.f32.mrb[3].mxu0 }
 0x188   : > { %v626_v42 = vpop.f32.mrb[4].mxu0 }
 0x189   : > { %v633_v45 = vadd.f32 %v626_v42, %v535_v37  ;;  %v1372_v46 = vpop.f32.mrb[5].mxu0 }
 0x18a   : > { %v629_v47 = vpop.f32.mrb[6].mxu0 }
 0x18b   : > { %v642_v49 = vadd.f32 %v1230_v43, %v633_v45  ;;  %v634_v50 = vadd.f32 %v629_v47, %v538_v40  ;;  %v1373_v51 = vpop.f32.mrb[7].mxu0 }
 0x18d   : > { %v644_v53 = vmax.f32 %v642_v49, 0.0  ;;  %v643_v54 = vadd.f32 %v1230_v43, %v634_v50 }
 0x18f   : > { %v1312_v56 = vpack.c.bf16 %v644_v53, %v644_v53  ;;  %v645_v57 = vmax.f32 %v643_v54, 0.0  ;;  %v1427_v53 = vld [vmem:[%s1778_s3 + $0x98] sm:$0xff]   ;;  %v1428_v54 = vld [vmem:[%s1778_s3 + $0xa0] sm:$0xff]  }
 0x191   : > { %v653_v59 = vshrl.u32 %v1312_v56, 16  ;;  %v1313_v60 = vpack.c.bf16 %v645_v57, %v645_v57  ;;  %v656_v63 = vshll.u32 %v1312_v56, 16  ;;  %v1430_v56 = vld [vmem:[%s1778_s3 + $0xb0] sm:$0xff]   ;;  %v1431_v57 = vld [vmem:[%s1778_s3 + $0xb8] sm:$0xff]  }
 0x193   : > { %v661_v1 = vshrl.u32 %v1313_v60, 16  ;;  %v655_v2 = vrot.slane %v653_v59, 7  ;;  %v664_v5 = vshll.u32 %v1313_v60, 16  ;;  %v1433_v59 = vld [vmem:[%s1778_s3 + $0xc8] sm:$0xff]   ;;  %v1434_v60 = vld [vmem:[%s1778_s3 + $0xd0] sm:$0xff]  }
 0x195   : > { %v663_v4 = vrot.slane %v661_v1, 7  ;;  %v658_v6 = vor.u32 %v656_v63, %v655_v2  ;;  %v659_v8 = vrot.slane %v655_v2, 4 }
 0x197   : > { %669 = vrot.lane.b32.xlu1 %v658_v6, %s1448_s25  ;;  %v666_v9 = vor.u32 %v664_v5, %v663_v4  ;;  %v668_v11 = vrot.slane %v663_v4, 4 }
 0x199   : > { %v667_v10 = vsel %vm1543_vm11, %v659_v8, %v666_v9  ;;  %vm688_vm11 = vmand %vm687_vm8, %vm271_vm4 }
 0x19a   : > { %671 = vrot.lane.b32.xlu0 %v667_v10, %s1448_s25  ;;  %vm689_vm5 = vmor %vm688_vm11, %vm686_vm10 }
 0x19b   : > { %673 = vrot.lane.b32.xlu1 %v668_v11, %s1448_s25  ;;  %vm701_vm4 = vmor %vm700_vm13, %vm1711_vm6 }
 0x209   : > { %v670_v29 = vpop.permute.xlu1 %669 }
 0x20a   : > { %v675_v14 = vrot.slane %v670_v29, 4 }
 0x20c   : > { %v679_v16 = vsel %vm678_vm12, %v675_v14, %v670_v29  ;;  %v672_v17 = vpop.permute.xlu0 %671 }
 0x20d   : > { %v691_v18 = vsel %vm689_vm5, %v679_v16, %v690_v13  ;;  %v676_v19 = vrot.slane %v672_v17, 4  ;;  %v674_v20 = vpop.permute.xlu1 %673 }
 0x20e   : > { %692 = vst [vmem:[#allocation3] sm:$0xff] %v691_v18  ;;  %v677_v22 = vrot.slane %v674_v20, 4 }
 0x20f   : > { %v680_v23 = vsel %vm678_vm12, %v676_v19, %v672_v17 }
 0x210   : > { %696 = vst.msk [vmem:[#allocation3 + $0x8] sm:$0xff] %vm695_vm3, %v680_v23  ;;  %v681_v24 = vsel %vm678_vm12, %v677_v22, %v674_v20 }
 0x211   : > { %v703_v25 = vsel %vm701_vm4, %v681_v24, %v702_v21 }
 0x212   : > { %704 = vst [vmem:[#allocation3 + $0x10] sm:$0x11] %v703_v25 }
 0x215   : > { %v980_v34 = vld [vmem:[#allocation3] sm:$0xee] }
 0x217   : > { %v706_v26 = vld [vmem:[#allocation3 + $0x8] sm:$0xff] }
 0x218   : > { %v1252_v27 = vcombine.high %v691_v18, %v706_v26  ;;  %v1251_v28 = vcombine.low %v691_v18, %v706_v26  ;;  %v1294_v36 = vcombine.high %v980_v34, %v706_v26  ;;  %v1293_v61 = vcombine.low %v980_v34, %v706_v26 }
 0x219   : > { %v725_v30 = vld [vmem:[#allocation3 + $0x10] sm:$0x11] }
 0x21a   : > { %1274 = vmatprep.mubr.msk.bf16.mxu0 %vm837_vm0, %v1252_v27  ;;  %v1254_v31 = vcombine.high %v725_v30, %v725_v30  ;;  %v773_v32 = vshll.u32 %v1252_v27, 16  ;;  %v1253_v33 = vcombine.low %v725_v30, %v725_v30  ;;  %v761_v35 = vshll.u32 %v1251_v28, 16 }
 0x21b   : > { %972 = vmatmul.mubr.bf16.vlgmr.msra.gmra.mrb[8].mxu0 %v1251_v28  ;;  %v771_v37 = vshrl.u32 %v1252_v27, 16  ;;  %v759_v41 = vshrl.u32 %v1251_v28, 16  ;;  %v1008_v50 = vrot.slane %v1294_v36, 1  ;;  %v1005_v63 = vrot.slane %v1293_v61, 1 }
 0x21c   : > { %v775_v38 = vrot.slane %v773_v32, 1  ;;  %v778_v39 = vshll.u32 %v1254_v31, 16  ;;  %v766_v40 = vshll.u32 %v1253_v33, 16  ;;  %v763_v42 = vrot.slane %v761_v35, 1 }
 0x21d   : > { %v1009_v46 = vrot.slane %v1254_v31, 1  ;;  %v1006_v62 = vrot.slane %v1253_v33, 1 }
 0x21e   : > { %v776_v43 = vor.u32 %v775_v38, %v771_v37  ;;  %v780_v44 = vrot.slane %v778_v39, 1  ;;  %v768_v45 = vrot.slane %v766_v40, 1  ;;  %v764_v47 = vor.u32 %v763_v42, %v759_v41 }
 0x21f   : > { %v1010_v52 = vsel %vm555_vm7, %v1008_v50, %v1009_v46  ;;  %v1007_v1 = vsel %vm555_vm7, %v1005_v63, %v1006_v62 }
 0x220   : > { %v781_v49 = vsel %vm379_vm9, %v776_v43, %v780_v44  ;;  %v769_v51 = vsel %vm379_vm9, %v764_v47, %v768_v45 }
 0x221   : > { %1264 = vmatprep.mubr.msk.bf16.mxu1 %vm837_vm0, %v781_v49 }
 0x222   : > { %874 = vmatmul.mubr.bf16.vlgmr.msra.gmra.mrb[4].mxu1 %v769_v51 }
 0x223   : > { %1070 = vmatpush1.bf16.msra.mxu1 %v1425_v48  ;;  %1304 = vmatprep.mubr.msk.bf16.mxu1 %vm837_vm0, %v1010_v52 }
 0x224   : > { %1071 = vmatprep.subr.bf16.mxu1 %v1445_v12 }
 0x227   : > { %1072 = vmatpush1.bf16.msra.mxu1 %v1427_v53 }
 0x228   : > { %1073 = vmatprep.subr.bf16.mxu1 %v1445_v12 }
 0x22b   : > { %1074 = vmatpush1.bf16.msra.mxu1 %v1428_v54 }
 0x22c   : > { %1075 = vmatprep.subr.bf16.mxu1 %v1445_v12 }
 0x22f   : > { %1076 = vmatpush1.bf16.msra.mxu1 %v1429_v55 }
 0x230   : > { %1077 = vmatprep.subr.bf16.mxu1 %v1445_v12 }
 0x233   : > { %1078 = vmatpush1.bf16.msra.mxu1 %v1430_v56 }
 0x234   : > { %1079 = vmatprep.subr.bf16.mxu1 %v1445_v12 }
 0x237   : > { %1080 = vmatpush1.bf16.msra.mxu1 %v1431_v57 }
 0x238   : > { %1081 = vmatprep.subr.bf16.mxu1 %v1445_v12 }
 0x23b   : > { %1082 = vmatpush1.bf16.msra.mxu1 %v1432_v58 }
 0x23c   : > { %1083 = vmatprep.subr.bf16.mxu1 %v1445_v12 }
 0x23f   : > { %1084 = vmatpush1.bf16.msra.mxu1 %v1433_v59 }
 0x240   : > { %1085 = vmatprep.subr.bf16.mxu1 %v1445_v12  ;;  %v1305_v12 = vld [vmem:[%s1779_s4] ss:$0 sm:$0xff] }
 0x243   : > { %1086 = vmatpush1.bf16.msra.mxu1 %v1434_v60 }
 0x246   : > { %1102 = vmatmul.mubr.bf16.vlgmr.msra.gmra.mrb[8].mxu1 %v1007_v1 }
 0x2ee   : > { %v973_v2 = vpop.f32.mrb[8].mxu0 }
 0x2ef   : > { %v975_v3 = vpop.f32.mrb[9].mxu0 }
 0x2f0   : > { %v976_v4 = vpop.f32.mrb[10].mxu0 }
 0x2f1   : > { %v978_v5 = vpop.f32.mrb[11].mxu0 }
 0x2f5   : > { %v875_v6 = vpop.f32.mrb[4].mxu1 }
 0x2f6   : > { %v974_v7 = vadd.f32 %v973_v2, %v875_v6  ;;  %v877_v8 = vpop.f32.mrb[5].mxu1 }
 0x2f7   : > { %v878_v9 = vpop.f32.mrb[6].mxu1 }
 0x2f8   : > { %v977_v10 = vadd.f32 %v976_v4, %v878_v9  ;;  %v880_v11 = vpop.f32.mrb[7].mxu1 }
 0x319   : > { %v1103_v0 = vpop.f32.mrb[8].mxu1 }
 0x31a   : > { %v1110_v29 = vadd.f32 %v1103_v0, %v974_v7  ;;  %v1105_v13 = vpop.f32.mrb[9].mxu1 }
 0x31b   : > { %v1106_v14 = vpop.f32.mrb[10].mxu1 }
 0x31c   : > { %v1119_v15 = vadd.f32 %v1305_v12, %v1110_v29  ;;  %v1111_v16 = vadd.f32 %v1106_v14, %v977_v10  ;;  %v1108_v17 = vpop.f32.mrb[11].mxu1 }
 0x31e   : > { %v1121_v18 = vmax.f32 %v1119_v15, 0.0  ;;  %v1120_v19 = vadd.f32 %v1305_v12, %v1111_v16 }
 0x320   : > { %1123 = vst [vmem:[%s224_s28] sm:$0xff] %v1121_v18  ;;  %v1122_v20 = vmax.f32 %v1120_v19, 0.0 }
 0x322   : > { %1124 = vst [vmem:[%s224_s28 + $0x8] sm:$0xff] %v1122_v20 }
 0x323 PF: > { %s15_s18 = sadd.s32 1, %s1442_s18  }
 0x324   : > { %p12_p4 = scmp.ge.s32.totalorder %s15_s18, 4  }
 0x326   :  { %14 = sbr.rel (!%p12_p4) target bundleno = 1 (0x1), region = 74 }

</bundles_post_ra>
